<compile_context>
chip_gen: v6e
topology: v6e:2x2x1
jax: 0.10.0
libtpu: 0.0.40
codegen_flags: <defaults>
</compile_context>

<pallas_src>
import jax
import jax.numpy as jnp
from jax import lax
from jax.experimental import pallas as pl
from jax.experimental.pallas import tpu as pltpu


def _attention_kernel(q_ref, c_ref, w_in_t_ref, w_out_t_ref, out_ref, attn_ref):
    tb, tq, d = q_ref.shape          # (batch tile, L_out tile, D)
    l_q = c_ref.shape[1]
    in_dtype = q_ref.dtype

    q = q_ref[...]                   # [tb, tq, d]
    ctx = c_ref[...]                 # [tb, l_q, d]

    # linear_in: one big MXU matmul with M = tb*tq rows.
    qg = jnp.dot(q.reshape(tb * tq, d), w_in_t_ref[...],
                 preferred_element_type=jnp.float32).reshape(tb, tq, d)
    qg = qg.astype(in_dtype)         # keep matmul operands in input dtype, acc in f32

    # scores[b, l, s] = sum_d qg[b, l, d] * ctx[b, s, d]
    # batched dot_general, contraction on the last dim of BOTH operands -> no transpose.
    scores = lax.dot_general(qg, ctx, (((2,), (2,)), ((0,), (0,))),
                             preferred_element_type=jnp.float32)   # [tb, tq, l_q]

    # Numerically stable softmax along the last axis.
    m = jnp.max(scores, axis=-1, keepdims=True)
    e = jnp.exp(scores - m)
    # Exact reciprocal: the weights are an external output checked against the reference.
    weights = e * pl.reciprocal(jnp.sum(e, axis=-1, keepdims=True), approx=False)

    # mix = weights @ context  (batched)  -> [tb, tq, d]
    mix = lax.dot_general(weights.astype(in_dtype), ctx,
                          (((2,), (1,)), ((0,), (0,))),
                          preferred_element_type=jnp.float32)

    # linear_out as a single fused K = 2D matmul over the lane-axis concat [mix | q'].
    combined = jnp.concatenate([mix.astype(in_dtype), qg], axis=-1)   # [tb, tq, 2d]
    out = jnp.dot(combined.reshape(tb * tq, 2 * d), w_out_t_ref[...],
                  preferred_element_type=jnp.float32).reshape(tb, tq, d)

    out_ref[...] = jnp.tanh(out).astype(out_ref.dtype)
    attn_ref[...] = weights.astype(attn_ref.dtype)


def attention_general(query, context, w_in, w_out, *, tb=None, tq=None):
    """query [B, L_out, D], context [B, L_q, D],
       w_in [D, D] (PyTorch nn.Linear weight), w_out [D, 2D] (PyTorch nn.Linear weight).
       Returns (output [B, L_out, D], weights [B, L_out, L_q])."""
    B, L_out, D = query.shape
    L_q = context.shape[1]
    assert context.shape == (B, L_q, D)

    # Pre-transpose PyTorch-style weights so in-kernel matmuls are plain x @ W.
    w_in_t = jnp.asarray(w_in).T           # [D, D]
    w_out_t = jnp.asarray(w_out).T         # [2D, D]

    # Tile sizes: several batch elements per grid step, plus an L_out axis for megacore
    # load-balancing / VMEM fit at large L_out (v7x: 64 MiB, 2 TCs).
    if tb is None:
        tb = B if B <= 8 else 8
    if tq is None:
        tq = L_out if L_out <= 256 else 256
    if tq != L_out:
        tq = max(8, (tq // 8) * 8)         # tiled second-to-last dims must be multiples of 8

    grid = (pl.cdiv(B, tb), pl.cdiv(L_out, tq))

    out_shape = (
        jax.ShapeDtypeStruct((B, L_out, D), query.dtype),
        jax.ShapeDtypeStruct((B, L_out, L_q), query.dtype),
    )

    grid_spec = pltpu.PrefetchScalarGridSpec(
        num_scalar_prefetch=0,
        grid=grid,
        in_specs=[
            pl.BlockSpec((tb, tq, D), lambda b, i: (b, i, 0)),      # query tile
            pl.BlockSpec((tb, L_q, D), lambda b, i: (b, 0, 0)),     # context (full L_q)
            pl.BlockSpec((D, D), lambda b, i: (0, 0)),              # w_in_t  (constant index)
            pl.BlockSpec((2 * D, D), lambda b, i: (0, 0)),          # w_out_t (constant index)
        ],
        out_specs=[
            pl.BlockSpec((tb, tq, D), lambda b, i: (b, i, 0)),      # output
            pl.BlockSpec((tb, tq, L_q), lambda b, i: (b, i, 0)),    # attention weights
        ],
    )

    # Advisory cost estimate so XLA can schedule surrounding ops around the custom call.
    flops = 2 * B * L_out * (3 * D * D + 2 * L_q * D)
    transcendentals = B * L_out * (L_q + D)                          # exp + tanh
    itemsize = jnp.dtype(query.dtype).itemsize
    bytes_accessed = itemsize * (
        B * L_out * D * 2 + B * L_q * D + 3 * D * D + B * L_out * L_q)
    cost = pl.CostEstimate(flops=flops, transcendentals=transcendentals,
                           bytes_accessed=bytes_accessed)

    # Raise the scoped-VMEM limit only when the double-buffered blocks actually need it.
    block_bytes = 4 * (2 * tb * tq * D        # query in + output out blocks
                       + tb * L_q * D         # context block
                       + 3 * D * D            # both weight blocks
                       + tb * tq * L_q)       # attention-weights block
    vmem_est = 3 * 2 * block_bytes            # double buffering + temporaries headroom
    vmem_limit = None
    if vmem_est > 32 * 1024 * 1024:
        vmem_limit = min(int(vmem_est), 100 * 1024 * 1024)

    compiler_params = pltpu.CompilerParams(
        dimension_semantics=("parallel", "parallel"),
        vmem_limit_bytes=vmem_limit,
    )

    return pl.pallas_call(
        _attention_kernel,
        out_shape=out_shape,
        grid_spec=grid_spec,
        compiler_params=compiler_params,
        cost_estimate=cost,
    )(query, context, w_in_t, w_out_t)


def _reference(query, context, w_in, w_out):
    # Pure-JAX reference mirroring the PyTorch forward (true f32 matmuls).
    hp = lax.Precision.HIGHEST
    qg = jnp.einsum("bld,ed->ble", query, w_in, precision=hp)        # linear_in
    scores = jnp.einsum("bld,bqd->blq", qg, context, precision=hp)   # bmm
    weights = jax.nn.softmax(scores, axis=-1)
    mix = jnp.einsum("blq,bqd->bld", weights, context, precision=hp) # bmm
    combined = jnp.concatenate([mix, qg], axis=-1)
    out = jnp.tanh(jnp.einsum("blc,dc->bld", combined, w_out, precision=hp))
    return out, weights


if __name__ == "__main__":
    # Small but lane-dense shapes: D and L_q are multiples of 128 so all stores
    # (including the attention-weights output) are full-lane, unmasked vst.
    B, L_out, L_q, D = 4, 16, 128, 128

    key = jax.random.PRNGKey(0)
    k_q, k_c, k_win, k_wout = jax.random.split(key, 4)

    query = jax.random.normal(k_q, (B, L_out, D), dtype=jnp.float32)
    context = jax.random.normal(k_c, (B, L_q, D), dtype=jnp.float32)

    # Deterministic parameter init (uniform, like PyTorch default scale 1/sqrt(fan_in)).
    w_in = jax.random.uniform(k_win, (D, D), dtype=jnp.float32,
                              minval=-1.0 / jnp.sqrt(D), maxval=1.0 / jnp.sqrt(D))
    w_out = jax.random.uniform(k_wout, (D, 2 * D), dtype=jnp.float32,
                               minval=-1.0 / jnp.sqrt(2 * D), maxval=1.0 / jnp.sqrt(2 * D))

    out, weights = attention_general(query, context, w_in, w_out)
    jax.block_until_ready((out, weights))

    ref_out, ref_w = _reference(query, context, w_in, w_out)
    assert out.shape == (B, L_out, D) and weights.shape == (B, L_out, L_q)
    assert jnp.allclose(out, ref_out, atol=2e-5, rtol=2e-5)
    assert jnp.allclose(weights, ref_w, atol=2e-5, rtol=2e-5)

    print("KERNEL_OK")
</pallas_src>

<mosaic_0001>
module attributes {stable_mosaic.version = 11 : i64} {
  func.func @_attention_kernel(%arg0: i32, %arg1: i32, %arg2: memref<4x16x128xf32, #tpu.memory_space<vmem>>, %arg3: memref<4x128x128xf32, #tpu.memory_space<vmem>>, %arg4: memref<128x128xf32, #tpu.memory_space<vmem>>, %arg5: memref<256x128xf32, #tpu.memory_space<vmem>>, %arg6: memref<4x16x128xf32, #tpu.memory_space<vmem>>, %arg7: memref<4x16x128xf32, #tpu.memory_space<vmem>>) attributes {dimension_semantics = [#tpu.dimension_semantics<parallel>, #tpu.dimension_semantics<parallel>], iteration_bounds = array<i64: 1, 1>, scalar_prefetch = 0 : i64, scratch_operands = 0 : i64, tpu.core_type = #tpu.core_type<tc>, window_params = [{transform_indices = @transform_0, window_bounds = array<i64: 4, 16, 128>}, {transform_indices = @transform_1, window_bounds = array<i64: 4, 128, 128>}, {pipeline_mode = #tpu.pipeline_mode<synchronous>, transform_indices = @transform_2, window_bounds = array<i64: 128, 128>}, {pipeline_mode = #tpu.pipeline_mode<synchronous>, transform_indices = @transform_3, window_bounds = array<i64: 256, 128>}, {transform_indices = @transform_4, window_bounds = array<i64: 4, 16, 128>}, {transform_indices = @transform_5, window_bounds = array<i64: 4, 16, 128>}]} {
    %c0 = arith.constant 0 : index
    %c0_0 = arith.constant 0 : index
    %c0_1 = arith.constant 0 : index
    %0 = vector.load %arg2[%c0, %c0_0, %c0_1] : memref<4x16x128xf32, #tpu.memory_space<vmem>>, vector<4x16x128xf32>
    %c0_2 = arith.constant 0 : index
    %c0_3 = arith.constant 0 : index
    %c0_4 = arith.constant 0 : index
    %1 = vector.load %arg3[%c0_2, %c0_3, %c0_4] : memref<4x128x128xf32, #tpu.memory_space<vmem>>, vector<4x128x128xf32>
    %2 = vector.shape_cast %0 : vector<4x16x128xf32> to vector<64x128xf32>
    %c0_5 = arith.constant 0 : index
    %c0_6 = arith.constant 0 : index
    %3 = vector.load %arg4[%c0_5, %c0_6] : memref<128x128xf32, #tpu.memory_space<vmem>>, vector<128x128xf32>
    %cst = arith.constant dense<0.000000e+00> : vector<64x128xf32>
    %4 = tpu.matmul %2, %3, %cst {dimension_numbers = #tpu.dot_dimension_numbers<[1], [0], [0], [1], [0, 0, 1, 1], [], []>} : vector<64x128xf32>, vector<128x128xf32>, vector<64x128xf32> -> vector<64x128xf32>
    %5 = vector.shape_cast %4 : vector<64x128xf32> to vector<4x16x128xf32>
    %cst_7 = arith.constant dense<0.000000e+00> : vector<4x16x128xf32>
    %6 = tpu.matmul %5, %1, %cst_7 {dimension_numbers = #tpu.dot_dimension_numbers<[2], [2], [1], [1], [0, 0, 0, 1, 1, 1], [0], [0]>} : vector<4x16x128xf32>, vector<4x128x128xf32>, vector<4x16x128xf32> -> vector<4x16x128xf32>
    %cst_8 = arith.constant dense<0xFF800000> : vector<4x16xf32>
    %7 = vector.multi_reduction <maximumf>, %6, %cst_8 [2] : vector<4x16x128xf32> to vector<4x16xf32>
    %8 = vector.shape_cast %7 : vector<4x16xf32> to vector<4x16x1xf32>
    %9 = vector.broadcast %8 : vector<4x16x1xf32> to vector<4x16x128xf32>
    %10 = arith.subf %6, %9 : vector<4x16x128xf32>
    %11 = math.exp %10 : vector<4x16x128xf32>
    %cst_9 = arith.constant dense<0.000000e+00> : vector<4x16xf32>
    %12 = vector.multi_reduction <add>, %11, %cst_9 [2] : vector<4x16x128xf32> to vector<4x16xf32>
    %13 = vector.shape_cast %12 : vector<4x16xf32> to vector<4x16x1xf32>
    %14 = tpu.reciprocal %13 : vector<4x16x1xf32> -> vector<4x16x1xf32>
    %15 = vector.broadcast %14 : vector<4x16x1xf32> to vector<4x16x128xf32>
    %16 = arith.mulf %11, %15 : vector<4x16x128xf32>
    %cst_10 = arith.constant dense<0.000000e+00> : vector<4x16x128xf32>
    %17 = tpu.matmul %16, %1, %cst_10 {dimension_numbers = #tpu.dot_dimension_numbers<[2], [1], [1], [2], [0, 0, 0, 1, 1, 2], [0], [0]>} : vector<4x16x128xf32>, vector<4x128x128xf32>, vector<4x16x128xf32> -> vector<4x16x128xf32>
    %18 = tpu.concatenate %17, %5 in 2 : vector<4x16x128xf32>, vector<4x16x128xf32> -> vector<4x16x256xf32>
    %19 = vector.shape_cast %18 : vector<4x16x256xf32> to vector<64x256xf32>
    %c0_11 = arith.constant 0 : index
    %c0_12 = arith.constant 0 : index
    %20 = vector.load %arg5[%c0_11, %c0_12] : memref<256x128xf32, #tpu.memory_space<vmem>>, vector<256x128xf32>
    %cst_13 = arith.constant dense<0.000000e+00> : vector<64x128xf32>
    %21 = tpu.matmul %19, %20, %cst_13 {dimension_numbers = #tpu.dot_dimension_numbers<[1], [0], [0], [1], [0, 0, 1, 1], [], []>} : vector<64x256xf32>, vector<256x128xf32>, vector<64x128xf32> -> vector<64x128xf32>
    %22 = vector.shape_cast %21 : vector<64x128xf32> to vector<4x16x128xf32>
    %23 = math.tanh %22 : vector<4x16x128xf32>
    %c0_14 = arith.constant 0 : index
    %c0_15 = arith.constant 0 : index
    %c0_16 = arith.constant 0 : index
    %24 = vector.load %arg6[%c0_14, %c0_15, %c0_16] : memref<4x16x128xf32, #tpu.memory_space<vmem>>, vector<4x16x128xf32>
    tpu.vector_store %arg6[%c0_14, %c0_15, %c0_16], %23 {strides = array<i32>} : memref<4x16x128xf32, #tpu.memory_space<vmem>>, vector<4x16x128xf32>,
    %c0_17 = arith.constant 0 : index
    %c0_18 = arith.constant 0 : index
    %c0_19 = arith.constant 0 : index
    %25 = vector.load %arg7[%c0_17, %c0_18, %c0_19] : memref<4x16x128xf32, #tpu.memory_space<vmem>>, vector<4x16x128xf32>
    tpu.vector_store %arg7[%c0_17, %c0_18, %c0_19], %16 {strides = array<i32>} : memref<4x16x128xf32, #tpu.memory_space<vmem>>, vector<4x16x128xf32>,
    return
  }
  func.func @transform_0(%arg0: i32, %arg1: i32) -> (i32, i32, i32) {
    %c0_i32 = arith.constant 0 : i32
    %c0_i32_0 = arith.constant 0 : i32
    return %arg0, %arg1, %c0_i32 : i32, i32, i32
  }
  func.func @transform_1(%arg0: i32, %arg1: i32) -> (i32, i32, i32) {
    %c0_i32 = arith.constant 0 : i32
    %c0_i32_0 = arith.constant 0 : i32
    %c0_i32_1 = arith.constant 0 : i32
    return %arg0, %c0_i32, %c0_i32_0 : i32, i32, i32
  }
  func.func @transform_2(%arg0: i32, %arg1: i32) -> (i32, i32) {
    %c0_i32 = arith.constant 0 : i32
    %c0_i32_0 = arith.constant 0 : i32
    %c0_i32_1 = arith.constant 0 : i32
    return %c0_i32, %c0_i32_0 : i32, i32
  }
  func.func @transform_3(%arg0: i32, %arg1: i32) -> (i32, i32) {
    %c0_i32 = arith.constant 0 : i32
    %c0_i32_0 = arith.constant 0 : i32
    %c0_i32_1 = arith.constant 0 : i32
    return %c0_i32, %c0_i32_0 : i32, i32
  }
  func.func @transform_4(%arg0: i32, %arg1: i32) -> (i32, i32, i32) {
    %c0_i32 = arith.constant 0 : i32
    %c0_i32_0 = arith.constant 0 : i32
    return %arg0, %arg1, %c0_i32 : i32, i32, i32
  }
  func.func @transform_5(%arg0: i32, %arg1: i32) -> (i32, i32, i32) {
    %c0_i32 = arith.constant 0 : i32
    %c0_i32_0 = arith.constant 0 : i32
    return %arg0, %arg1, %c0_i32 : i32, i32, i32
  }
}

</mosaic_0001>

<bundles_post_ra>
// kernel: tpu_custom_call.1
= control target key start
LH: loop header
LB: loop body
LE: loop exit
PB: predicated region body
PF: predicated region fallthrough
CT: control target
= control target key end

     0   :  { %11 = vsyncpa [#allocation3], 0  ;;  %s2377_s0 = inlined_call_operand.hbm [shape: f32[4,16,128], index: 0, kind: input, shape index: {}]   ;;  %s2378_s1 = inlined_call_operand.hbm [shape: f32[4,128,128], index: 1, kind: input, shape index: {}]   ;;  %s2379_s2 = inlined_call_operand.hbm [shape: f32[128,128], index: 2, kind: input, shape index: {}]   ;;  %s2380_s3 = inlined_call_operand.hbm [shape: f32[256,128], index: 3, kind: input, shape index: {}]   ;;  %s2381_s4 = inlined_call_operand.hbm [shape: f32[4,16,128], index: 4, kind: output, shape index: {0}]   ;;  %s2382_s5 = inlined_call_operand.hbm [shape: f32[4,16,128], index: 5, kind: output, shape index: {1}]  }
   0x1   :  { %12 = vsyncpa [#allocation6], 0 }
   0x2   :  { %13 = vsyncpa [#allocation9], 0 }
   0x3   :  { %14 = vsyncpa [#allocation4], 0 }
   0x4   :  { %15 = vsyncpa [#allocation12], 0  ;;  %s1871_s18 = smov [#allocation5]   ;;  %s1872_s20 = smov [#allocation2]  }
   0x5   :  { %s33_s19 = sshll.u32 %s1871_s18, 4  ;;  %s21_s21 = sshll.u32 %s1872_s20, 4  ;;  %s34_s19 = int_to_ptr.vmem [resolvable:$true] %s33_s19  ;;  %s22_s21 = int_to_ptr.vmem [resolvable:$true] %s21_s21 }
   0x6   :  { %s1749_s22 = scalar_lea.vmem %s34_s19, 8192  ;;  %p1754_p1 = scmp.lt.s32.totalorder %s34_s19, %s34_s19 }
   0x7   :  { %p1750_p0 = scmp.ne.s32.totalorder %s34_s19, %s1749_s22  ;;  %p1755_p2 = scmp.lt.s32.totalorder %s1749_s22, %s1749_s22 }
   0x9   :  { %p1756_p3 = por %p1755_p2, %p1754_p1 }
   0xb   :  { %p1757_p4 = pnand %p1756_p3, %p1750_p0 }
   0xd   :  { %1760 = shalt.err (!%p1757_p4)
}
   0xe   :  { %s1873_s23 = smov 128   ;;  %s1874_s24 = smov 8  }
   0xf   :  { %39 = dma.hbm_to_vmem [thread:$0]  %s2378_s1, 8192, %s34_s19, [#allocation6], %s1873_s23, %s1873_s23, %s1874_s24  }
  0x10   :  { %s1769_s27 = scalar_lea.vmem %s22_s21, 1024  ;;  %p1774_p6 = scmp.lt.s32.totalorder %s22_s21, %s22_s21 }
  0x11   :  { %p1770_p5 = scmp.ne.s32.totalorder %s22_s21, %s1769_s27  ;;  %p1775_p7 = scmp.lt.s32.totalorder %s1769_s27, %s1769_s27 }
  0x13   :  { %p1776_p8 = por %p1775_p7, %p1774_p6 }
  0x15   :  { %p1777_p9 = pnand %p1776_p8, %p1770_p5 }
  0x17   :  { %1780 = shalt.err (!%p1777_p9)
}
  0x18   :  { %27 = dma.hbm_to_vmem [thread:$0]  %s2377_s0, 1024, %s22_s21, [#allocation3], %s1873_s23, %s1873_s23, %s1874_s24  }
  0x19   :  { %s1875_s30 = smov [#allocation7]   ;;  %s1876_s7 = smov [#allocation8]  }
  0x1a   :  { %s45_s6 = sshll.u32 %s1875_s30, 4  ;;  %s57_s8 = sshll.u32 %s1876_s7, 4  ;;  %s46_s6 = int_to_ptr.vmem [resolvable:$true] %s45_s6  ;;  %s58_s8 = int_to_ptr.vmem [resolvable:$true] %s57_s8 }
  0x1b   :  { %s1789_s1 = scalar_lea.vmem %s46_s6, 2048  ;;  %p1794_p11 = scmp.lt.s32.totalorder %s46_s6, %s46_s6 }
  0x1c   :  { %p1790_p10 = scmp.ne.s32.totalorder %s46_s6, %s1789_s1  ;;  %p1795_p12 = scmp.lt.s32.totalorder %s1789_s1, %s1789_s1 }
  0x1e   :  { %p1796_p13 = por %p1795_p12, %p1794_p11 }
  0x20   :  { %p1797_p0 = pnand %p1796_p13, %p1790_p10 }
  0x22   :  { %1800 = shalt.err (!%p1797_p0)
}
  0x23   :  { %51 = dma.hbm_to_vmem [thread:$0]  %s2379_s2, 2048, %s46_s6, [#allocation6], %s1873_s23, %s1873_s23, %s1874_s24  }
  0x24   :  { %s1809_s0 = scalar_lea.vmem %s58_s8, 4096  ;;  %p1814_p2 = scmp.lt.s32.totalorder %s58_s8, %s58_s8 }
  0x25   :  { %p1810_p1 = scmp.ne.s32.totalorder %s58_s8, %s1809_s0  ;;  %p1815_p3 = scmp.lt.s32.totalorder %s1809_s0, %s1809_s0 }
  0x27   :  { %p1816_p4 = por %p1815_p3, %p1814_p2 }
  0x29   :  { %p1817_p5 = pnand %p1816_p4, %p1810_p1 }
  0x2b   :  { %1820 = shalt.err (!%p1817_p5)
}
  0x2c   :  { %63 = dma.hbm_to_vmem [thread:$0]  %s2380_s3, 4096, %s58_s8, [#allocation9], %s1873_s23, %s1873_s23, %s1874_s24  }
  0x2d   :  { %1861 = dma.done.wait [#allocation3], 1024  }
  0x2e   :  { %1862 = vsyncadd [#allocation3], 4294966272 }
  0x2f   :  { %1863 = dma.done.wait [#allocation6], 10240  }
  0x30   :  { %1864 = vsyncadd [#allocation6], 4294957056 }
  0x31   :  { %1865 = dma.done.wait [#allocation9], 4096  }
  0x32   :  { %1866 = vsyncadd [#allocation9], 4294963200  ;;  %v163_v0 = vld [vmem:[#allocation7 + $0x78] sm:$0xff]  ;;  %v162_v1 = vld [vmem:[#allocation7 + $0x70] sm:$0xff]  ;;  %s1877_s2 = smov [#allocation11]  }
  0x33   :  { %1361 = vmatprep.subr.mxu0 %v163_v0  ;;  %v161_v2 = vld [vmem:[#allocation7 + $0x68] sm:$0xff]  ;;  %v160_v3 = vld [vmem:[#allocation7 + $0x60] sm:$0xff]  ;;  %v159_v5 = vld [vmem:[#allocation7 + $0x58] sm:$0xff]  ;;  %s1119_s3 = sshll.u32 %s1877_s2, 4  ;;  %s1120_s3 = int_to_ptr.vmem [resolvable:$true] %s1119_s3 }
  0x34   :  { %1362 = vmatpush3.msra.mxu0 %v163_v0  ;;  %v76_v4 = vld [vmem:[#allocation2] sm:$0xff]  ;;  %v158_v6 = vld [vmem:[#allocation7 + $0x50] sm:$0xff]  ;;  %v1933_v7 = vld [vmem:[#allocation5 + $0x78] sm:$0xff]  ;;  %s1821_s13 = scalar_lea.vmem %s1120_s3, 1024  ;;  %p1826_p7 = scmp.lt.s32.totalorder %s1120_s3, %s1120_s3 }
  0x35   :  { %1363 = vmatprep.subr.mxu0 %v162_v1  ;;  %1393 = vmatprep.mubr.f32.mxu0 %v76_v4  ;;  %v1935_v8 = vld [vmem:[#allocation5 + $0x70] sm:$0xff]  ;;  %v157_v9 = vld [vmem:[#allocation7 + $0x48] sm:$0xff]  ;;  %v156_v10 = vld [vmem:[#allocation7 + $0x40] sm:$0xff]  ;;  %p1822_p6 = scmp.ne.s32.totalorder %s1120_s3, %s1821_s13  ;;  %p1827_p8 = scmp.lt.s32.totalorder %s1821_s13, %s1821_s13 }
  0x36   :  { %1364 = vmatpush3.msra.mxu0 %v162_v1  ;;  %1405 = vmatprep.subr.mxu1 %v1933_v7  ;;  %v1940_v11 = vld [vmem:[#allocation5 + $0x68] sm:$0xff]  ;;  %v155_v12 = vld [vmem:[#allocation7 + $0x38] sm:$0xff]  ;;  %v154_v13 = vld [vmem:[#allocation7 + $0x30] sm:$0xff] }
  0x37   :  { %1365 = vmatprep.subr.mxu0 %v161_v2  ;;  %1406 = vmatpush3.xpose.msra.mxu1 %v1933_v7  ;;  %v1944_v14 = vld [vmem:[#allocation5 + $0x60] sm:$0xff]  ;;  %v153_v15 = vld [vmem:[#allocation7 + $0x28] sm:$0xff]  ;;  %v1948_v17 = vld [vmem:[#allocation5 + $0x58] sm:$0xff]  ;;  %p1828_p9 = por %p1827_p8, %p1826_p7 }
  0x38   :  { %1366 = vmatpush3.msra.mxu0 %v161_v2  ;;  %1407 = vmatprep.subr.mxu1 %v1935_v8  ;;  %v152_v16 = vld [vmem:[#allocation7 + $0x20] sm:$0xff]  ;;  %v151_v18 = vld [vmem:[#allocation7 + $0x18] sm:$0xff]  ;;  %v150_v19 = vld [vmem:[#allocation7 + $0x10] sm:$0xff] }
  0x39   :  { %1367 = vmatprep.subr.mxu0 %v160_v3  ;;  %v1952_v20 = vld [vmem:[#allocation5 + $0x50] sm:$0xff]  ;;  %v149_v21 = vld [vmem:[#allocation7 + $0x8] sm:$0xff]  ;;  %v148_v22 = vld [vmem:[#allocation7] sm:$0xff]  ;;  %p1829_p10 = pnand %p1828_p9, %p1822_p6 }
  0x3a   :  { %1368 = vmatpush3.msra.mxu0 %v160_v3  ;;  %v1956_v23 = vld [vmem:[#allocation5 + $0x48] sm:$0xff]  ;;  %v1958_v25 = vld [vmem:[#allocation5 + $0xf8] sm:$0xff]  ;;  %v78_v26 = vld [vmem:[#allocation2 + $0x10] sm:$0xff] }
  0x3b   :  { %1369 = vmatprep.subr.mxu0 %v159_v5  ;;  %1408 = vmatpush3.xpose.msra.mxu1 %v1935_v8  ;;  %v77_v24 = vld [vmem:[#allocation2 + $0x8] sm:$0xff]  ;;  %v1962_v27 = vld [vmem:[#allocation5 + $0xf0] sm:$0xff]  ;;  %v1965_v28 = vld [vmem:[#allocation5 + $0x40] sm:$0xff] }
  0x3c   :  { %1370 = vmatpush3.msra.mxu0 %v159_v5  ;;  %1409 = vmatprep.subr.mxu1 %v1940_v11  ;;  %v79_v29 = vld [vmem:[#allocation2 + $0x18] sm:$0xff]  ;;  %v80_v30 = vld [vmem:[#allocation2 + $0x20] sm:$0xff]  ;;  %v1970_v31 = vld [vmem:[#allocation5 + $0xe8] sm:$0xff] }
  0x3d   :  { %1371 = vmatprep.subr.mxu0 %v158_v6  ;;  %v1973_v32 = vld [vmem:[#allocation5 + $0x38] sm:$0xff]  ;;  %v81_v33 = vld [vmem:[#allocation2 + $0x28] sm:$0xff]  ;;  %v82_v34 = vld [vmem:[#allocation2 + $0x30] sm:$0xff] }
  0x3e   :  { %1372 = vmatpush3.msra.mxu0 %v158_v6  ;;  %v1978_v35 = vld [vmem:[#allocation5 + $0xe0] sm:$0xff]  ;;  %v1981_v36 = vld [vmem:[#allocation5 + $0x30] sm:$0xff]  ;;  %v83_v37 = vld [vmem:[#allocation2 + $0x38] sm:$0xff] }
  0x3f   :  { %1373 = vmatprep.subr.mxu0 %v157_v9  ;;  %1410 = vmatpush3.xpose.msra.mxu1 %v1940_v11  ;;  %v1986_v38 = vld [vmem:[#allocation5 + $0xd8] sm:$0xff]  ;;  %v1989_v39 = vld [vmem:[#allocation5 + $0x28] sm:$0xff]  ;;  %v1994_v40 = vld [vmem:[#allocation5 + $0xd0] sm:$0xff] }
  0x40   :  { %1374 = vmatpush3.msra.mxu0 %v157_v9  ;;  %1411 = vmatprep.subr.mxu1 %v1944_v14  ;;  %v1997_v41 = vld [vmem:[#allocation5 + $0x20] sm:$0xff]  ;;  %v2002_v42 = vld [vmem:[#allocation5 + $0xc8] sm:$0xff]  ;;  %v2005_v43 = vld [vmem:[#allocation5 + $0x18] sm:$0xff] }
  0x41   :  { %1375 = vmatprep.subr.mxu0 %v156_v10  ;;  %v2010_v44 = vld [vmem:[#allocation5 + $0xc0] sm:$0xff]  ;;  %v2013_v45 = vld [vmem:[#allocation5 + $0x10] sm:$0xff]  ;;  %v2018_v46 = vld [vmem:[#allocation5 + $0xb8] sm:$0xff] }
  0x42   :  { %1376 = vmatpush3.msra.mxu0 %v156_v10  ;;  %v2021_v47 = vld [vmem:[#allocation5 + $0x8] sm:$0xff]  ;;  %v2026_v48 = vld [vmem:[#allocation5 + $0xb0] sm:$0xff]  ;;  %v2029_v49 = vld [vmem:[#allocation5] sm:$0xff] }
  0x43   :  { %1377 = vmatprep.subr.mxu0 %v155_v12  ;;  %1412 = vmatpush3.xpose.msra.mxu1 %v1944_v14  ;;  %v2034_v50 = vld [vmem:[#allocation5 + $0xa8] sm:$0xff]  ;;  %v2040_v51 = vld [vmem:[#allocation5 + $0xa0] sm:$0xff]  ;;  %v2044_v52 = vld [vmem:[#allocation5 + $0x98] sm:$0xff] }
  0x44   :  { %1378 = vmatpush3.msra.mxu0 %v155_v12  ;;  %1413 = vmatprep.subr.mxu1 %v1948_v17  ;;  %v2048_v53 = vld [vmem:[#allocation5 + $0x90] sm:$0xff]  ;;  %v2052_v54 = vld [vmem:[#allocation5 + $0x88] sm:$0xff]  ;;  %v2057_v55 = vld [vmem:[#allocation5 + $0x80] sm:$0xff] }
  0x45   :  { %1379 = vmatprep.subr.mxu0 %v154_v13  ;;  %v2059_v56 = vld [vmem:[#allocation5 + $0x178] sm:$0xff]  ;;  %v2072_v60 = vld [vmem:[#allocation5 + $0x170] sm:$0xff]  ;;  %v2082_v63 = vld [vmem:[#allocation5 + $0x168] sm:$0xff] }
  0x46   :  { %1380 = vmatpush3.msra.mxu0 %v154_v13  ;;  %v2064_v57 = vld [vmem:[#allocation5 + $0x1f8] sm:$0xff]  ;;  %v2084_v0 = vld [vmem:[#allocation5 + $0x1f0] sm:$0xff]  ;;  %v2095_v3 = vld [vmem:[#allocation5 + $0x160] sm:$0xff] }
  0x47   :  { %1381 = vmatprep.subr.mxu0 %v153_v15  ;;  %1414 = vmatpush3.xpose.msra.mxu1 %v1948_v17  ;;  %v2097_v4 = vld [vmem:[#allocation5 + $0x1e8] sm:$0xff]  ;;  %v2108_v9 = vld [vmem:[#allocation5 + $0x158] sm:$0xff]  ;;  %v2110_v10 = vld [vmem:[#allocation5 + $0x1e0] sm:$0xff] }
  0x48   :  { %1382 = vmatpush3.msra.mxu0 %v153_v15  ;;  %1415 = vmatprep.subr.mxu1 %v1952_v20  ;;  %v2117_v12 = vld [vmem:[#allocation5 + $0x150] sm:$0xff]  ;;  %v2119_v13 = vld [vmem:[#allocation5 + $0x1d8] sm:$0xff]  ;;  %v2125_v15 = vld [vmem:[#allocation5 + $0x148] sm:$0xff] }
  0x49   :  { %1383 = vmatprep.subr.mxu0 %v152_v16 }
  0x4a   :  { %1384 = vmatpush3.msra.mxu0 %v152_v16  ;;  %v2127_v16 = vld [vmem:[#allocation5 + $0x1d0] sm:$0xff] }
  0x4b   :  { %1385 = vmatprep.subr.mxu0 %v151_v18  ;;  %1416 = vmatpush3.xpose.msra.mxu1 %v1952_v20 }
  0x4c   :  { %1386 = vmatpush3.msra.mxu0 %v151_v18  ;;  %1417 = vmatprep.subr.mxu1 %v1956_v23  ;;  %v2133_v18 = vld [vmem:[#allocation5 + $0x140] sm:$0xff] }
  0x4d   :  { %1387 = vmatprep.subr.mxu0 %v150_v19 }
  0x4e   :  { %1388 = vmatpush3.msra.mxu0 %v150_v19  ;;  %v2135_v19 = vld [vmem:[#allocation5 + $0x1c8] sm:$0xff] }
  0x4f   :  { %1389 = vmatprep.subr.mxu0 %v149_v21  ;;  %1418 = vmatpush3.xpose.msra.mxu1 %v1956_v23 }
  0x50   :  { %1390 = vmatpush3.msra.mxu0 %v149_v21  ;;  %1419 = vmatprep.subr.mxu1 %v1965_v28  ;;  %v2141_v21 = vld [vmem:[#allocation5 + $0x138] sm:$0xff] }
  0x51   :  { %1391 = vmatprep.subr.mxu0 %v148_v22 }
  0x52   :  { %1392 = vmatpush3.msra.mxu0 %v148_v22  ;;  %v2143_v22 = vld [vmem:[#allocation5 + $0x1c0] sm:$0xff] }
  0x53   :  { %1394 = vmatmul.mubr.f32.vlgmr.msra.gmra.mxu0 %v77_v24  ;;  %1440 = vmatprep.subr.mxu0 %v1958_v25  ;;  %v2149_v24 = vld [vmem:[#allocation5 + $0x130] sm:$0xff] }
  0x54   :  { %1396 = vmatprep.mubr.f32.mxu0 %v78_v26  ;;  %1441 = vmatpush3.xpose.msra.mxu0 %v1958_v25  ;;  %v2151_v26 = vld [vmem:[#allocation5 + $0x1b8] sm:$0xff] }
  0x55   :  { %1442 = vmatprep.subr.mxu0 %v1962_v27  ;;  %1420 = vmatpush3.xpose.msra.mxu1 %v1965_v28 }
  0x56   :  { %1421 = vmatprep.subr.mxu1 %v1973_v32 }
  0x57   :  { %1397 = vmatmul.mubr.f32.gmra.mxu0 %v79_v29  ;;  %v2157_v29 = vld [vmem:[#allocation5 + $0x128] sm:$0xff] }
  0x58   :  { %1399 = vmatprep.mubr.f32.mxu0 %v80_v30  ;;  %1443 = vmatpush3.xpose.msra.mxu0 %v1962_v27  ;;  %v2159_v30 = vld [vmem:[#allocation5 + $0x1b0] sm:$0xff] }
  0x59   :  { %1444 = vmatprep.subr.mxu0 %v1970_v31  ;;  %1422 = vmatpush3.xpose.msra.mxu1 %v1973_v32 }
  0x5a   :  { %1423 = vmatprep.subr.mxu1 %v1981_v36 }
  0x5b   :  { %1400 = vmatmul.mubr.f32.gmra.mxu0 %v81_v33  ;;  %v2165_v33 = vld [vmem:[#allocation5 + $0x120] sm:$0xff] }
  0x5c   :  { %1402 = vmatprep.mubr.f32.mxu0 %v82_v34  ;;  %1445 = vmatpush3.xpose.msra.mxu0 %v1970_v31  ;;  %v2167_v34 = vld [vmem:[#allocation5 + $0x1a8] sm:$0xff] }
  0x5d   :  { %1446 = vmatprep.subr.mxu0 %v1978_v35  ;;  %1424 = vmatpush3.xpose.msra.mxu1 %v1981_v36  ;;  %2399 = vst [vmem:[#allocation24_spill] sm:$0xff] %v2167_v34 }
  0x5e   :  { %1425 = vmatprep.subr.mxu1 %v1989_v39 }
  0x5f   :  { %1403 = vmatmul.mubr.f32.gmra.mxu0 %v83_v37  ;;  %v2173_v37 = vld [vmem:[#allocation5 + $0x118] sm:$0xff] }
  0x60   :  { %1447 = vmatpush3.xpose.msra.mxu0 %v1978_v35 }
  0x61   :  { %1448 = vmatprep.subr.mxu0 %v1986_v38  ;;  %1426 = vmatpush3.xpose.msra.mxu1 %v1989_v39 }
  0x62   :  { %1427 = vmatprep.subr.mxu1 %v1997_v41 }
  0x64   :  { %1449 = vmatpush3.xpose.msra.mxu0 %v1986_v38 }
  0x65   :  { %1450 = vmatprep.subr.mxu0 %v1994_v40  ;;  %1428 = vmatpush3.xpose.msra.mxu1 %v1997_v41 }
  0x66   :  { %1429 = vmatprep.subr.mxu1 %v2005_v43 }
  0x68   :  { %1451 = vmatpush3.xpose.msra.mxu0 %v1994_v40 }
  0x69   :  { %1452 = vmatprep.subr.mxu0 %v2002_v42  ;;  %1430 = vmatpush3.xpose.msra.mxu1 %v2005_v43 }
  0x6a   :  { %1431 = vmatprep.subr.mxu1 %v2013_v45 }
  0x6c   :  { %1453 = vmatpush3.xpose.msra.mxu0 %v2002_v42 }
  0x6d   :  { %1454 = vmatprep.subr.mxu0 %v2010_v44  ;;  %1432 = vmatpush3.xpose.msra.mxu1 %v2013_v45 }
  0x6e   :  { %1433 = vmatprep.subr.mxu1 %v2021_v47 }
  0x70   :  { %1455 = vmatpush3.xpose.msra.mxu0 %v2010_v44 }
  0x71   :  { %1456 = vmatprep.subr.mxu0 %v2018_v46  ;;  %1434 = vmatpush3.xpose.msra.mxu1 %v2021_v47 }
  0x72   :  { %1435 = vmatprep.subr.mxu1 %v2029_v49 }
  0x74   :  { %1457 = vmatpush3.xpose.msra.mxu0 %v2018_v46 }
  0x75   :  { %1458 = vmatprep.subr.mxu0 %v2026_v48  ;;  %1436 = vmatpush3.xpose.msra.mxu1 %v2029_v49 }
  0x76   :  { %1475 = vmatprep.subr.mxu1 %v2059_v56 }
  0x78   :  { %1459 = vmatpush3.xpose.msra.mxu0 %v2026_v48 }
  0x79   :  { %1460 = vmatprep.subr.mxu0 %v2034_v50 }
  0x7c   :  { %1461 = vmatpush3.xpose.msra.mxu0 %v2034_v50 }
  0x7d   :  { %1462 = vmatprep.subr.mxu0 %v2040_v51 }
  0x80   :  { %1463 = vmatpush3.xpose.msra.mxu0 %v2040_v51 }
  0x81   :  { %1464 = vmatprep.subr.mxu0 %v2044_v52 }
  0x84   :  { %1465 = vmatpush3.xpose.msra.mxu0 %v2044_v52 }
  0x85   :  { %1466 = vmatprep.subr.mxu0 %v2048_v53 }
  0x88   :  { %1467 = vmatpush3.xpose.msra.mxu0 %v2048_v53 }
  0x89   :  { %1468 = vmatprep.subr.mxu0 %v2052_v54 }
  0x8c   :  { %1469 = vmatpush3.xpose.msra.mxu0 %v2052_v54 }
  0x8d   :  { %1470 = vmatprep.subr.mxu0 %v2057_v55 }
  0x90   :  { %1471 = vmatpush3.xpose.msra.mxu0 %v2057_v55 }
  0x91   :  { %1510 = vmatprep.subr.mxu0 %v2064_v57 }
 0x113   :  { %v2067_v58 = vpop.f32.mrf.mxu0 }
 0x114   :  { %2393 = vst [vmem:[#allocation18_spill] sm:$0xff] %v2067_v58 }
 0x115   :  { %v2069_v59 = vpop.f32.mrf.mxu0 }
 0x116   :  { %2394 = vst [vmem:[#allocation19_spill] sm:$0xff] %v2069_v59  ;;  %1437 = vmatprep.mubr.f32.mxu1 %v2069_v59  ;;  %v2197_v59 = vld [vmem:[#allocation5 + $0x100] sm:$0xff] }
 0x117   :  { %v2074_v61 = vpop.f32.mrf.mxu0  ;;  %1438 = vmatmul.mubr.f32.vlgmr.msra.gmra.mxu1 %v2067_v58  ;;  %v2191_v58 = vld [vmem:[#allocation5 + $0x190] sm:$0xff] }
 0x118   :  { %2395 = vst [vmem:[#allocation20_spill] sm:$0xff] %v2074_v61  ;;  %1476 = vmatpush3.xpose.msra.mxu1 %v2059_v56 }
 0x119   :  { %v2078_v62 = vpop.f32.mrf.mxu0  ;;  %1477 = vmatprep.subr.mxu1 %v2072_v60 }
 0x11a   :  { %2396 = vst [vmem:[#allocation21_spill] sm:$0xff] %v2078_v62  ;;  %1472 = vmatprep.mubr.f32.mxu0 %v2078_v62  ;;  %v2189_v62 = vld [vmem:[#allocation5 + $0x108] sm:$0xff] }
 0x11b   :  { %1473 = vmatmul.mubr.f32.vlgmr.msra.gmra.mxu0 %v2074_v61  ;;  %v2087_v1 = vpop.f32.mrf.mxu0  ;;  %v2183_v61 = vld [vmem:[#allocation5 + $0x198] sm:$0xff] }
 0x11c   :  { %1478 = vmatpush3.xpose.msra.mxu1 %v2072_v60  ;;  %1511 = vmatpush3.xpose.msra.mxu0 %v2064_v57 }
 0x11d   :  { %1479 = vmatprep.subr.mxu1 %v2082_v63  ;;  %1512 = vmatprep.subr.mxu0 %v2084_v0  ;;  %v2093_v2 = vpop.f32.mrf.mxu0 }
 0x11e   :  { %2397 = vst [vmem:[#allocation22_spill] sm:$0xff] %v2093_v2  ;;  %1507 = vmatprep.mubr.f32.mxu1 %v2093_v2  ;;  %v2181_v2 = vld [vmem:[#allocation5 + $0x110] sm:$0xff] }
 0x11f   :  { %v2100_v5 = vpop.f32.mrf.mxu0 }
 0x120   :  { %1480 = vmatpush3.xpose.msra.mxu1 %v2082_v63  ;;  %1513 = vmatpush3.xpose.msra.mxu0 %v2084_v0 }
 0x121   :  { %1481 = vmatprep.subr.mxu1 %v2095_v3  ;;  %1514 = vmatprep.subr.mxu0 %v2097_v4  ;;  %v2106_v6 = vpop.f32.mrf.mxu0 }
 0x122   :  { %2398 = vst [vmem:[#allocation23_spill] sm:$0xff] %v2106_v6  ;;  %1542 = vmatprep.mubr.f32.mxu0 %v2106_v6  ;;  %v2175_v6 = vld [vmem:[#allocation5 + $0x1a0] sm:$0xff] }
 0x123   :  { %2400 = vst [vmem:[#allocation25_spill] sm:$0xff] %v2175_v6 }
 0x124   :  { %1482 = vmatpush3.xpose.msra.mxu1 %v2095_v3  ;;  %1515 = vmatpush3.xpose.msra.mxu0 %v2097_v4 }
 0x125   :  { %1483 = vmatprep.subr.mxu1 %v2108_v9  ;;  %1516 = vmatprep.subr.mxu0 %v2110_v10 }
 0x128   :  { %1484 = vmatpush3.xpose.msra.mxu1 %v2108_v9  ;;  %1517 = vmatpush3.xpose.msra.mxu0 %v2110_v10 }
 0x129   :  { %1485 = vmatprep.subr.mxu1 %v2117_v12  ;;  %1518 = vmatprep.subr.mxu0 %v2119_v13 }
 0x12c   :  { %1486 = vmatpush3.xpose.msra.mxu1 %v2117_v12  ;;  %1519 = vmatpush3.xpose.msra.mxu0 %v2119_v13 }
 0x12d   :  { %1487 = vmatprep.subr.mxu1 %v2125_v15  ;;  %1520 = vmatprep.subr.mxu0 %v2127_v16 }
 0x130   :  { %1488 = vmatpush3.xpose.msra.mxu1 %v2125_v15  ;;  %1521 = vmatpush3.xpose.msra.mxu0 %v2127_v16 }
 0x131   :  { %1489 = vmatprep.subr.mxu1 %v2133_v18  ;;  %1522 = vmatprep.subr.mxu0 %v2135_v19 }
 0x134   :  { %1490 = vmatpush3.xpose.msra.mxu1 %v2133_v18  ;;  %1523 = vmatpush3.xpose.msra.mxu0 %v2135_v19 }
 0x135   :  { %1491 = vmatprep.subr.mxu1 %v2141_v21  ;;  %1524 = vmatprep.subr.mxu0 %v2143_v22 }
 0x138   :  { %1492 = vmatpush3.xpose.msra.mxu1 %v2141_v21  ;;  %1525 = vmatpush3.xpose.msra.mxu0 %v2143_v22 }
 0x139   :  { %1493 = vmatprep.subr.mxu1 %v2149_v24  ;;  %1526 = vmatprep.subr.mxu0 %v2151_v26 }
 0x13c   :  { %1494 = vmatpush3.xpose.msra.mxu1 %v2149_v24  ;;  %1527 = vmatpush3.xpose.msra.mxu0 %v2151_v26 }
 0x13d   :  { %1495 = vmatprep.subr.mxu1 %v2157_v29  ;;  %1528 = vmatprep.subr.mxu0 %v2159_v30 }
 0x140   :  { %1496 = vmatpush3.xpose.msra.mxu1 %v2157_v29  ;;  %1529 = vmatpush3.xpose.msra.mxu0 %v2159_v30 }
 0x141   :  { %1497 = vmatprep.subr.mxu1 %v2165_v33  ;;  %1530 = vmatprep.subr.mxu0 %v2167_v34 }
 0x144   :  { %1498 = vmatpush3.xpose.msra.mxu1 %v2165_v33  ;;  %1531 = vmatpush3.xpose.msra.mxu0 %v2167_v34  ;;  %v2199_v34 = vld [vmem:[#allocation5 + $0x188] sm:$0xff] }
 0x145   :  { %1499 = vmatprep.subr.mxu1 %v2173_v37  ;;  %1532 = vmatprep.subr.mxu0 %v2175_v6 }
 0x148   :  { %1500 = vmatpush3.xpose.msra.mxu1 %v2173_v37  ;;  %1533 = vmatpush3.xpose.msra.mxu0 %v2175_v6  ;;  %v2205_v6 = vld [vmem:[#allocation5 + $0x180] sm:$0xff] }
 0x149   :  { %1501 = vmatprep.subr.mxu1 %v2181_v2  ;;  %1534 = vmatprep.subr.mxu0 %v2183_v61 }
 0x14c   :  { %1502 = vmatpush3.xpose.msra.mxu1 %v2181_v2  ;;  %1535 = vmatpush3.xpose.msra.mxu0 %v2183_v61 }
 0x14d   :  { %1503 = vmatprep.subr.mxu1 %v2189_v62  ;;  %1536 = vmatprep.subr.mxu0 %v2191_v58 }
 0x150   :  { %1504 = vmatpush3.xpose.msra.mxu1 %v2189_v62  ;;  %1537 = vmatpush3.xpose.msra.mxu0 %v2191_v58 }
 0x151   :  { %1505 = vmatprep.subr.mxu1 %v2197_v59  ;;  %1538 = vmatprep.subr.mxu0 %v2199_v34 }
 0x154   :  { %1506 = vmatpush3.xpose.msra.mxu1 %v2197_v59  ;;  %1539 = vmatpush3.xpose.msra.mxu0 %v2199_v34 }
 0x155   :  { %1540 = vmatprep.subr.mxu0 %v2205_v6  ;;  %1545 = vmatprep.subr.mxu1 %v1933_v7 }
 0x157   :  { %1508 = vmatmul.mubr.f32.vlgmr.msra.gmra.mxu1 %v2087_v1 }
 0x158   :  { %1541 = vmatpush3.xpose.msra.mxu0 %v2205_v6  ;;  %1546 = vmatpush3.msra.mxu1 %v1933_v7 }
 0x159   :  { %1547 = vmatprep.subr.mxu1 %v1935_v8  ;;  %1580 = vmatprep.subr.mxu0 %v1958_v25 }
 0x15a   :  { %1548 = vmatpush3.msra.mxu1 %v1935_v8 }
 0x15b   :  { %1543 = vmatmul.mubr.f32.vlgmr.msra.gmra.mxu0 %v2100_v5  ;;  %1549 = vmatprep.subr.mxu1 %v1940_v11 }
 0x15c   :  { %1550 = vmatpush3.msra.mxu1 %v1940_v11  ;;  %1581 = vmatpush3.msra.mxu0 %v1958_v25 }
 0x15d   :  { %1551 = vmatprep.subr.mxu1 %v1944_v14  ;;  %1582 = vmatprep.subr.mxu0 %v1962_v27 }
 0x15e   :  { %1552 = vmatpush3.msra.mxu1 %v1944_v14  ;;  %1583 = vmatpush3.msra.mxu0 %v1962_v27 }
 0x15f   :  { %1553 = vmatprep.subr.mxu1 %v1948_v17  ;;  %1584 = vmatprep.subr.mxu0 %v1970_v31 }
 0x160   :  { %1554 = vmatpush3.msra.mxu1 %v1948_v17  ;;  %1585 = vmatpush3.msra.mxu0 %v1970_v31 }
 0x161   :  { %1555 = vmatprep.subr.mxu1 %v1952_v20  ;;  %1586 = vmatprep.subr.mxu0 %v1978_v35 }
 0x162   :  { %1556 = vmatpush3.msra.mxu1 %v1952_v20  ;;  %1587 = vmatpush3.msra.mxu0 %v1978_v35 }
 0x163   :  { %1557 = vmatprep.subr.mxu1 %v1956_v23  ;;  %1588 = vmatprep.subr.mxu0 %v1986_v38 }
 0x164   :  { %1558 = vmatpush3.msra.mxu1 %v1956_v23  ;;  %1589 = vmatpush3.msra.mxu0 %v1986_v38 }
 0x165   :  { %1559 = vmatprep.subr.mxu1 %v1965_v28  ;;  %1590 = vmatprep.subr.mxu0 %v1994_v40 }
 0x166   :  { %1560 = vmatpush3.msra.mxu1 %v1965_v28  ;;  %1591 = vmatpush3.msra.mxu0 %v1994_v40 }
 0x167   :  { %1561 = vmatprep.subr.mxu1 %v1973_v32  ;;  %1592 = vmatprep.subr.mxu0 %v2002_v42 }
 0x168   :  { %1562 = vmatpush3.msra.mxu1 %v1973_v32  ;;  %1593 = vmatpush3.msra.mxu0 %v2002_v42 }
 0x169   :  { %1563 = vmatprep.subr.mxu1 %v1981_v36  ;;  %1594 = vmatprep.subr.mxu0 %v2010_v44 }
 0x16a   :  { %1564 = vmatpush3.msra.mxu1 %v1981_v36  ;;  %1595 = vmatpush3.msra.mxu0 %v2010_v44 }
 0x16b   :  { %1565 = vmatprep.subr.mxu1 %v1989_v39  ;;  %1596 = vmatprep.subr.mxu0 %v2018_v46 }
 0x16c   :  { %1566 = vmatpush3.msra.mxu1 %v1989_v39  ;;  %1597 = vmatpush3.msra.mxu0 %v2018_v46 }
 0x16d   :  { %1567 = vmatprep.subr.mxu1 %v1997_v41  ;;  %1598 = vmatprep.subr.mxu0 %v2026_v48 }
 0x16e   :  { %1568 = vmatpush3.msra.mxu1 %v1997_v41  ;;  %1599 = vmatpush3.msra.mxu0 %v2026_v48 }
 0x16f   :  { %1569 = vmatprep.subr.mxu1 %v2005_v43  ;;  %1600 = vmatprep.subr.mxu0 %v2034_v50 }
 0x170   :  { %1570 = vmatpush3.msra.mxu1 %v2005_v43  ;;  %1601 = vmatpush3.msra.mxu0 %v2034_v50 }
 0x171   :  { %1571 = vmatprep.subr.mxu1 %v2013_v45  ;;  %1602 = vmatprep.subr.mxu0 %v2040_v51 }
 0x172   :  { %1572 = vmatpush3.msra.mxu1 %v2013_v45  ;;  %1603 = vmatpush3.msra.mxu0 %v2040_v51 }
 0x173   :  { %1573 = vmatprep.subr.mxu1 %v2021_v47  ;;  %1604 = vmatprep.subr.mxu0 %v2044_v52 }
 0x174   :  { %1574 = vmatpush3.msra.mxu1 %v2021_v47  ;;  %1605 = vmatpush3.msra.mxu0 %v2044_v52 }
 0x175   :  { %1575 = vmatprep.subr.mxu1 %v2029_v49  ;;  %1606 = vmatprep.subr.mxu0 %v2048_v53 }
 0x176   :  { %1576 = vmatpush3.msra.mxu1 %v2029_v49  ;;  %1607 = vmatpush3.msra.mxu0 %v2048_v53 }
 0x177   :  { %1608 = vmatprep.subr.mxu0 %v2052_v54  ;;  %1615 = vmatprep.subr.mxu1 %v2059_v56 }
 0x178   :  { %1609 = vmatpush3.msra.mxu0 %v2052_v54 }
 0x179   :  { %1610 = vmatprep.subr.mxu0 %v2057_v55 }
 0x17a   :  { %1611 = vmatpush3.msra.mxu0 %v2057_v55 }
 0x17b   :  { %1650 = vmatprep.subr.mxu0 %v2064_v57 }
 0x1d7   :  { %v1439_v7 = vpop.f32.mrf.mxu1 }
 0x1d9   :  { %v335_v8 = vpop.f32.mrf.mxu1 }
 0x1da   :  { %569 = vmax.xlane.f32.xlu0 %v335_v8 }
 0x1db   :  { %v1474_v11 = vpop.f32.mrf.mxu0 }
 0x1dd   :  { %v410_v14 = vpop.f32.mrf.mxu0 }
 0x1de   :  { %571 = vmax.xlane.f32.xlu0 %v1439_v7  ;;  %573 = vmax.xlane.f32.xlu1 %v410_v14 }
 0x1e2   :  { %575 = vmax.xlane.f32.xlu1 %v1474_v11 }
 0x217   :  { %v1509_v17 = vpop.f32.mrf.mxu1 }
 0x218   :  { %579 = vmax.xlane.f32.xlu1 %v1509_v17 }
 0x219   :  { %v485_v20 = vpop.f32.mrf.mxu1 }
 0x21a   :  { %577 = vmax.xlane.f32.xlu0 %v485_v20 }
 0x21b   :  { %v1544_v23 = vpop.f32.mrf.mxu0 }
 0x21c   :  { %583 = vmax.xlane.f32.xlu1 %v1544_v23 }
 0x21d   :  { %v560_v25 = vpop.f32.mrf.mxu0 }
 0x21e   :  { %581 = vmax.xlane.f32.xlu0 %v560_v25 }
 0x263   :  { %v570_v27 = vpop.xlane.xlu0 %569 }
 0x264   :  { %v585_v28 = vsub.f32 %v335_v8, %v570_v27 }
 0x266   :  { %v593_v31 = vmul.f32 1.442695, %v585_v28 }
 0x267   :  { %v572_v32 = vpop.xlane.xlu0 %571  ;;  %v574_v35 = vpop.xlane.xlu1 %573 }
 0x268   :  { %1693 = vpow2.f32 %v593_v31  ;;  %v586_v36 = vsub.f32 %v1439_v7, %v572_v32  ;;  %v587_v38 = vsub.f32 %v410_v14, %v574_v35 }
 0x26a   :  { %v595_v39 = vmul.f32 1.442695, %v586_v36  ;;  %v597_v40 = vmul.f32 1.442695, %v587_v38 }
 0x26b   :  { %v576_v41 = vpop.xlane.xlu1 %575 }
 0x26c   :  { %1695 = vpow2.f32 %v595_v39  ;;  %v588_v42 = vsub.f32 %v1474_v11, %v576_v41 }
 0x26d   :  { %1697 = vpow2.f32 %v597_v40 }
 0x26e   :  { %v599_v43 = vmul.f32 1.442695, %v588_v42 }
 0x270   :  { %1699 = vpow2.f32 %v599_v43 }
 0x275   :  { %v1694_v44 = vpop.eup %1693 }
 0x276   :  { %609 = vadd.xlane.f32.xlu0 %v1694_v44 }
 0x279   :  { %v1696_v45 = vpop.eup %1695 }
 0x27a   :  { %v1698_v46 = vpop.eup %1697  ;;  %611 = vadd.xlane.f32.xlu1 %v1696_v45 }
 0x27b   :  { %613 = vadd.xlane.f32.xlu0 %v1698_v46 }
 0x27d   :  { %v1700_v47 = vpop.eup %1699 }
 0x27e   :  { %615 = vadd.xlane.f32.xlu1 %v1700_v47 }
 0x2a1   :  { %v580_v48 = vpop.xlane.xlu1 %579 }
 0x2a2   :  { %v590_v49 = vsub.f32 %v1509_v17, %v580_v48  ;;  %v947_v48 = vld [vmem:[#allocation8 + $0x30] sm:$0xff] }
 0x2a3   :  { %v578_v50 = vpop.xlane.xlu0 %577 }
 0x2a4   :  { %v603_v51 = vmul.f32 1.442695, %v590_v49  ;;  %v589_v52 = vsub.f32 %v485_v20, %v578_v50  ;;  %v962_v49 = vld [vmem:[#allocation8 + $0xa8] sm:$0xff] }
 0x2a5   :  { %v584_v53 = vpop.xlane.xlu1 %583  ;;  %v946_v50 = vld [vmem:[#allocation8 + $0x28] sm:$0xff] }
 0x2a6   :  { %1701 = vpow2.f32 %v603_v51  ;;  %v601_v54 = vmul.f32 1.442695, %v589_v52  ;;  %v592_v55 = vsub.f32 %v1544_v23, %v584_v53  ;;  %v961_v51 = vld [vmem:[#allocation8 + $0xa0] sm:$0xff]  ;;  %v960_v53 = vld [vmem:[#allocation8 + $0x98] sm:$0xff] }
 0x2a7   :  { %v582_v7 = vpop.xlane.xlu0 %581  ;;  %v945_v52 = vld [vmem:[#allocation8 + $0x20] sm:$0xff] }
 0x2a8   :  { %1703 = vpow2.f32 %v601_v54  ;;  %v607_v8 = vmul.f32 1.442695, %v592_v55  ;;  %v591_v11 = vsub.f32 %v560_v25, %v582_v7  ;;  %v944_v54 = vld [vmem:[#allocation8 + $0x18] sm:$0xff]  ;;  %v959_v55 = vld [vmem:[#allocation8 + $0x90] sm:$0xff] }
 0x2a9   :  { %v943_v7 = vld [vmem:[#allocation8 + $0x10] sm:$0xff] }
 0x2aa   :  { %1705 = vpow2.f32 %v607_v8  ;;  %v605_v14 = vmul.f32 1.442695, %v591_v11  ;;  %v958_v8 = vld [vmem:[#allocation8 + $0x88] sm:$0xff] }
 0x2ab   :  { %v942_v11 = vld [vmem:[#allocation8 + $0x8] sm:$0xff] }
 0x2ac   :  { %1707 = vpow2.f32 %v605_v14  ;;  %v957_v14 = vld [vmem:[#allocation8 + $0x80] sm:$0xff] }
 0x2b3   :  { %v2279_v27 = vpop.eup %1701 }
 0x2b4   :  { %619 = vadd.xlane.f32.xlu1 %v2279_v27 }
 0x2b5   :  { %v2282_v28 = vpop.eup %1703 }
 0x2b6   :  { %617 = vadd.xlane.f32.xlu0 %v2282_v28 }
 0x2b7   :  { %v2285_v17 = vpop.eup %1705 }
 0x2b8   :  { %623 = vadd.xlane.f32.xlu1 %v2285_v17 }
 0x2b9   :  { %v2288_v20 = vpop.eup %1707 }
 0x2ba   :  { %621 = vadd.xlane.f32.xlu0 %v2288_v20 }
 0x2ff   :  { %v610_v23 = vpop.xlane.xlu0 %609 }
 0x300   :  { %1709 = vrcp.f32 %v610_v23 }
 0x303   :  { %v612_v25 = vpop.xlane.xlu1 %611 }
 0x304   :  { %1711 = vrcp.f32 %v612_v25  ;;  %v614_v31 = vpop.xlane.xlu0 %613  ;;  %v2405_v25 = vld [vmem:[#allocation21_spill] sm:$0xff] }
 0x305   :  { %1713 = vrcp.f32 %v614_v31 }
 0x307   :  { %v616_v32 = vpop.xlane.xlu1 %615 }
 0x308   :  { %1715 = vrcp.f32 %v616_v32  ;;  %v2406_v32 = vld [vmem:[#allocation20_spill] sm:$0xff] }
 0x30d   :  { %v1710_v35 = vpop.eup %1709 }
 0x30e   :  { %v633_v36 = vmul.f32 %v1710_v35, %v1694_v44  ;;  %v949_v44 = vld [vmem:[#allocation8 + $0x40] sm:$0xff] }
 0x30f   :  { %v2407_v35 = vld [vmem:[#allocation22_spill] sm:$0xff] }
 0x310   :  { %1577 = vmatprep.mubr.f32.mxu1 %v633_v36  ;;  %1094 = vst [vmem:[#allocation11] sm:$0xff] %v633_v36 }
 0x311   :  { %v1712_v38 = vpop.eup %1711 }
 0x312   :  { %v1714_v39 = vpop.eup %1713  ;;  %v634_v40 = vmul.f32 %v1712_v38, %v1696_v45  ;;  %v964_v45 = vld [vmem:[#allocation8 + $0xb8] sm:$0xff] }
 0x313   :  { %v635_v41 = vmul.f32 %v1714_v39, %v1698_v46  ;;  %v948_v46 = vld [vmem:[#allocation8 + $0x38] sm:$0xff] }
 0x314   :  { %1578 = vmatmul.mubr.f32.vlgmr.msra.gmra.mxu1 %v634_v40  ;;  %1095 = vst [vmem:[#allocation11 + $0x8] sm:$0xff] %v634_v40  ;;  %v2408_v40 = vld [vmem:[#allocation23_spill] sm:$0xff] }
 0x315   :  { %v1716_v42 = vpop.eup %1715  ;;  %1612 = vmatprep.mubr.f32.mxu0 %v635_v41  ;;  %1096 = vst [vmem:[#allocation11 + $0x10] sm:$0xff] %v635_v41  ;;  %1616 = vmatpush3.msra.mxu1 %v2059_v56  ;;  %v2401_v56 = vld [vmem:[#allocation24_spill] sm:$0xff] }
 0x316   :  { %v636_v43 = vmul.f32 %v1716_v42, %v1700_v47  ;;  %1617 = vmatprep.subr.mxu1 %v2072_v60  ;;  %v963_v47 = vld [vmem:[#allocation8 + $0xb0] sm:$0xff] }
 0x317   :  { %1618 = vmatpush3.msra.mxu1 %v2072_v60  ;;  %v972_v60 = vld [vmem:[#allocation8 + $0xf8] sm:$0xff] }
 0x318   :  { %1613 = vmatmul.mubr.f32.vlgmr.msra.gmra.mxu0 %v636_v43  ;;  %1097 = vst [vmem:[#allocation11 + $0x18] sm:$0xff] %v636_v43  ;;  %1619 = vmatprep.subr.mxu1 %v2082_v63 }
 0x319   :  { %1620 = vmatpush3.msra.mxu1 %v2082_v63  ;;  %1651 = vmatpush3.msra.mxu0 %v2064_v57  ;;  %v2402_v57 = vld [vmem:[#allocation25_spill] sm:$0xff] }
 0x31a   :  { %1621 = vmatprep.subr.mxu1 %v2095_v3  ;;  %1652 = vmatprep.subr.mxu0 %v2084_v0 }
 0x31b   :  { %1622 = vmatpush3.msra.mxu1 %v2095_v3  ;;  %1653 = vmatpush3.msra.mxu0 %v2084_v0 }
 0x31c   :  { %1623 = vmatprep.subr.mxu1 %v2108_v9  ;;  %1654 = vmatprep.subr.mxu0 %v2097_v4 }
 0x31d   :  { %1624 = vmatpush3.msra.mxu1 %v2108_v9  ;;  %1655 = vmatpush3.msra.mxu0 %v2097_v4  ;;  %v956_v9 = vld [vmem:[#allocation8 + $0x78] sm:$0xff] }
 0x31e   :  { %1625 = vmatprep.subr.mxu1 %v2117_v12  ;;  %1656 = vmatprep.subr.mxu0 %v2110_v10 }
 0x31f   :  { %1626 = vmatpush3.msra.mxu1 %v2117_v12  ;;  %1657 = vmatpush3.msra.mxu0 %v2110_v10  ;;  %v971_v10 = vld [vmem:[#allocation8 + $0xf0] sm:$0xff] }
 0x320   :  { %1627 = vmatprep.subr.mxu1 %v2125_v15  ;;  %1658 = vmatprep.subr.mxu0 %v2119_v13 }
 0x321   :  { %1628 = vmatpush3.msra.mxu1 %v2125_v15  ;;  %1659 = vmatpush3.msra.mxu0 %v2119_v13  ;;  %v955_v13 = vld [vmem:[#allocation8 + $0x70] sm:$0xff]  ;;  %v2403_v15 = vld [vmem:[#allocation19_spill] sm:$0xff] }
 0x322   :  { %1629 = vmatprep.subr.mxu1 %v2133_v18  ;;  %1660 = vmatprep.subr.mxu0 %v2127_v16 }
 0x323   :  { %1630 = vmatpush3.msra.mxu1 %v2133_v18  ;;  %1661 = vmatpush3.msra.mxu0 %v2127_v16  ;;  %v970_v18 = vld [vmem:[#allocation8 + $0xe8] sm:$0xff] }
 0x324   :  { %1631 = vmatprep.subr.mxu1 %v2141_v21  ;;  %1662 = vmatprep.subr.mxu0 %v2135_v19 }
 0x325   :  { %1632 = vmatpush3.msra.mxu1 %v2141_v21  ;;  %1663 = vmatpush3.msra.mxu0 %v2135_v19  ;;  %v954_v19 = vld [vmem:[#allocation8 + $0x68] sm:$0xff]  ;;  %v969_v21 = vld [vmem:[#allocation8 + $0xe0] sm:$0xff] }
 0x326   :  { %1633 = vmatprep.subr.mxu1 %v2149_v24  ;;  %1664 = vmatprep.subr.mxu0 %v2143_v22 }
 0x327   :  { %1634 = vmatpush3.msra.mxu1 %v2149_v24  ;;  %1665 = vmatpush3.msra.mxu0 %v2143_v22  ;;  %v953_v22 = vld [vmem:[#allocation8 + $0x60] sm:$0xff]  ;;  %v968_v24 = vld [vmem:[#allocation8 + $0xd8] sm:$0xff] }
 0x328   :  { %1635 = vmatprep.subr.mxu1 %v2157_v29  ;;  %1666 = vmatprep.subr.mxu0 %v2151_v26 }
 0x329   :  { %1636 = vmatpush3.msra.mxu1 %v2157_v29  ;;  %1667 = vmatpush3.msra.mxu0 %v2151_v26  ;;  %v952_v26 = vld [vmem:[#allocation8 + $0x58] sm:$0xff]  ;;  %v967_v29 = vld [vmem:[#allocation8 + $0xd0] sm:$0xff] }
 0x32a   :  { %1637 = vmatprep.subr.mxu1 %v2165_v33  ;;  %1668 = vmatprep.subr.mxu0 %v2159_v30 }
 0x32b   :  { %1638 = vmatpush3.msra.mxu1 %v2165_v33  ;;  %1669 = vmatpush3.msra.mxu0 %v2159_v30  ;;  %v951_v30 = vld [vmem:[#allocation8 + $0x50] sm:$0xff]  ;;  %v966_v33 = vld [vmem:[#allocation8 + $0xc8] sm:$0xff] }
 0x32c   :  { %1639 = vmatprep.subr.mxu1 %v2173_v37  ;;  %1670 = vmatprep.subr.mxu0 %v2401_v56 }
 0x32d   :  { %1640 = vmatpush3.msra.mxu1 %v2173_v37  ;;  %1671 = vmatpush3.msra.mxu0 %v2401_v56  ;;  %v965_v37 = vld [vmem:[#allocation8 + $0xc0] sm:$0xff] }
 0x32e   :  { %1641 = vmatprep.subr.mxu1 %v2181_v2  ;;  %1672 = vmatprep.subr.mxu0 %v2402_v57 }
 0x32f   :  { %1642 = vmatpush3.msra.mxu1 %v2181_v2  ;;  %1673 = vmatpush3.msra.mxu0 %v2402_v57 }
 0x330   :  { %1643 = vmatprep.subr.mxu1 %v2189_v62  ;;  %1674 = vmatprep.subr.mxu0 %v2183_v61 }
 0x331   :  { %1644 = vmatpush3.msra.mxu1 %v2189_v62  ;;  %1675 = vmatpush3.msra.mxu0 %v2183_v61 }
 0x332   :  { %1645 = vmatprep.subr.mxu1 %v2197_v59  ;;  %1676 = vmatprep.subr.mxu0 %v2191_v58 }
 0x333   :  { %1646 = vmatpush3.msra.mxu1 %v2197_v59  ;;  %1677 = vmatpush3.msra.mxu0 %v2191_v58 }
 0x334   :  { %1678 = vmatprep.subr.mxu0 %v2199_v34  ;;  %1305 = vmatprep.subr.mxu1 %v972_v60 }
 0x335   :  { %1679 = vmatpush3.msra.mxu0 %v2199_v34  ;;  %v950_v34 = vld [vmem:[#allocation8 + $0x48] sm:$0xff] }
 0x336   :  { %1680 = vmatprep.subr.mxu0 %v2205_v6 }
 0x337   :  { %1681 = vmatpush3.msra.mxu0 %v2205_v6 }
 0x33d   :  { %v620_v62 = vpop.xlane.xlu1 %619 }
 0x33e   :  { %1717 = vrcp.f32 %v620_v62 }
 0x33f   :  { %v618_v61 = vpop.xlane.xlu0 %617 }
 0x340   :  { %1719 = vrcp.f32 %v618_v61 }
 0x341   :  { %v624_v63 = vpop.xlane.xlu1 %623 }
 0x342   :  { %1721 = vrcp.f32 %v624_v63 }
 0x343   :  { %v622_v0 = vpop.xlane.xlu0 %621 }
 0x344   :  { %1723 = vrcp.f32 %v622_v0 }
 0x34b   :  { %v1718_v59 = vpop.eup %1717 }
 0x34c   :  { %v638_v58 = vmul.f32 %v1718_v59, %v2279_v27  ;;  %v941_v27 = vld [vmem:[#allocation8] sm:$0xff] }
 0x34d   :  { %v1720_v2 = vpop.eup %1719 }
 0x34e   :  { %v637_v3 = vmul.f32 %v1720_v2, %v2282_v28  ;;  %1099 = vst [vmem:[#allocation11 + $0x28] sm:$0xff] %v638_v58 }
 0x34f   :  { %v1722_v4 = vpop.eup %1721 }
 0x350   :  { %1647 = vmatprep.mubr.f32.mxu1 %v637_v3  ;;  %1098 = vst [vmem:[#allocation11 + $0x20] sm:$0xff] %v637_v3  ;;  %v640_v6 = vmul.f32 %v1722_v4, %v2285_v17 }
 0x351   :  { %v1724_v12 = vpop.eup %1723  ;;  %1648 = vmatmul.mubr.f32.vlgmr.msra.gmra.mxu1 %v638_v58 }
 0x352   :  { %1037 = vmatprep.mubr.f32.mxu1 %v2403_v15  ;;  %v639_v16 = vmul.f32 %v1724_v12, %v2288_v20  ;;  %1101 = vst [vmem:[#allocation11 + $0x38] sm:$0xff] %v640_v6  ;;  %1306 = vmatpush3.msra.mxu1 %v956_v9  ;;  %v2404_v20 = vld [vmem:[#allocation18_spill] sm:$0xff] }
 0x353   :  { %1307 = vmatprep.subr.mxu1 %v971_v10 }
 0x354   :  { %1682 = vmatprep.mubr.f32.mxu0 %v639_v16  ;;  %1100 = vst [vmem:[#allocation11 + $0x30] sm:$0xff] %v639_v16  ;;  %1308 = vmatpush3.msra.mxu1 %v955_v13 }
 0x355   :  { %1683 = vmatmul.mubr.f32.vlgmr.msra.gmra.mxu0 %v640_v6  ;;  %1309 = vmatprep.subr.mxu1 %v970_v18 }
 0x356   :  { %1310 = vmatpush3.msra.mxu1 %v954_v19 }
 0x357   :  { %1311 = vmatprep.subr.mxu1 %v969_v21 }
 0x358   :  { %1312 = vmatpush3.msra.mxu1 %v953_v22 }
 0x359   :  { %1313 = vmatprep.subr.mxu1 %v968_v24 }
 0x35a   :  { %1314 = vmatpush3.msra.mxu1 %v952_v26 }
 0x35b   :  { %1315 = vmatprep.subr.mxu1 %v967_v29 }
 0x35c   :  { %1316 = vmatpush3.msra.mxu1 %v951_v30 }
 0x35d   :  { %1317 = vmatprep.subr.mxu1 %v966_v33 }
 0x35e   :  { %1318 = vmatpush3.msra.mxu1 %v950_v34 }
 0x35f   :  { %1319 = vmatprep.subr.mxu1 %v965_v37 }
 0x360   :  { %1320 = vmatpush3.msra.mxu1 %v949_v44 }
 0x361   :  { %1321 = vmatprep.subr.mxu1 %v964_v45 }
 0x362   :  { %1322 = vmatpush3.msra.mxu1 %v948_v46 }
 0x363   :  { %1323 = vmatprep.subr.mxu1 %v963_v47 }
 0x364   :  { %1324 = vmatpush3.msra.mxu1 %v947_v48 }
 0x365   :  { %1325 = vmatprep.subr.mxu1 %v962_v49 }
 0x366   :  { %1326 = vmatpush3.msra.mxu1 %v946_v50 }
 0x367   :  { %1327 = vmatprep.subr.mxu1 %v961_v51 }
 0x368   :  { %1328 = vmatpush3.msra.mxu1 %v945_v52 }
 0x369   :  { %1329 = vmatprep.subr.mxu1 %v960_v53 }
 0x36a   :  { %1330 = vmatpush3.msra.mxu1 %v944_v54 }
 0x36b   :  { %1331 = vmatprep.subr.mxu1 %v959_v55 }
 0x36c   :  { %1332 = vmatpush3.msra.mxu1 %v943_v7 }
 0x36d   :  { %1333 = vmatprep.subr.mxu1 %v958_v8 }
 0x36e   :  { %1334 = vmatpush3.msra.mxu1 %v942_v11 }
 0x36f   :  { %1335 = vmatprep.subr.mxu1 %v957_v14 }
 0x370   :  { %1336 = vmatpush3.msra.mxu1 %v941_v27 }
 0x3d4   :  { %v1579_v28 = vpop.f32.mrf.mxu1 }
 0x3d6   :  { %v707_v17 = vpop.f32.mrf.mxu1 }
 0x3d7   :  { %1038 = vmatmul.mubr.f32.vlgmr.msra.gmra.mxu1 %v707_v17 }
 0x3d8   :  { %1042 = vmatprep.mubr.f32.mxu1 %v2404_v20  ;;  %v1614_v23 = vpop.f32.mrf.mxu0 }
 0x3da   :  { %v782_v31 = vpop.f32.mrf.mxu0 }
 0x3db   :  { %1043 = vmatmul.mubr.f32.gmra.mxu1 %v1579_v28 }
 0x3dc   :  { %1047 = vmatprep.mubr.f32.mxu1 %v2405_v25 }
 0x3df   :  { %1048 = vmatmul.mubr.f32.gmra.mxu1 %v782_v31 }
 0x3e0   :  { %1052 = vmatprep.mubr.f32.mxu1 %v2406_v32 }
 0x3e3   :  { %1053 = vmatmul.mubr.f32.gmra.mxu1 %v1614_v23 }
 0x3e4   :  { %1057 = vmatprep.mubr.f32.mxu1 %v2407_v35 }
 0x411   :  { %v1649_v36 = vpop.f32.mrf.mxu1 }
 0x413   :  { %v857_v38 = vpop.f32.mrf.mxu1 }
 0x414   :  { %1058 = vmatmul.mubr.f32.gmra.mxu1 %v857_v38 }
 0x415   :  { %1062 = vmatprep.mubr.f32.mxu1 %v2087_v1  ;;  %v1684_v39 = vpop.f32.mrf.mxu0 }
 0x417   :  { %v932_v41 = vpop.f32.mrf.mxu0 }
 0x418   :  { %1063 = vmatmul.mubr.f32.gmra.mxu1 %v1649_v36 }
 0x419   :  { %1067 = vmatprep.mubr.f32.mxu1 %v2408_v40 }
 0x41c   :  { %1068 = vmatmul.mubr.f32.gmra.mxu1 %v932_v41 }
 0x41d   :  { %1072 = vmatprep.mubr.f32.mxu1 %v2100_v5 }
 0x420   :  { %1073 = vmatmul.mubr.f32.gmra.mxu1 %v1684_v39 }
 0x421   :  { %1832 = shalt.err (!%p1829_p10)
}
 0x422   :  { %1125 = dma.vmem_to_hbm [thread:$0]  %s1120_s3, 1024, %s2382_s5, [#allocation12], %s1873_s23, %s1873_s23, %s1874_s24  }
 0x423   :  { %s1878_s5 = smov [#allocation10]  }
 0x424   :  { %s1107_s16 = sshll.u32 %s1878_s5, 4  ;;  %s1108_s16 = int_to_ptr.vmem [resolvable:$true] %s1107_s16 }
 0x425   :  { %s1841_s17 = scalar_lea.vmem %s1108_s16, 1024  ;;  %p1846_p12 = scmp.lt.s32.totalorder %s1108_s16, %s1108_s16 }
 0x426   :  { %p1842_p11 = scmp.ne.s32.totalorder %s1108_s16, %s1841_s17  ;;  %p1847_p13 = scmp.lt.s32.totalorder %s1841_s17, %s1841_s17 }
 0x428   :  { %p1848_p0 = por %p1847_p13, %p1846_p12 }
 0x42a   :  { %p1849_p1 = pnand %p1848_p0, %p1842_p11 }
 0x497   :  { %v1337_v1 = vpop.f32.mrf.mxu1 }
 0x499   :  { %v1338_v5 = vpop.f32.mrf.mxu1 }
 0x49a   :  { %v1339_v42 = vadd.f32 %v1338_v5, %v1337_v1 }
 0x49b   :  { %v1340_v43 = vpop.f32.mrf.mxu1 }
 0x49c   :  { %1725 = vtanh.f32 %v1339_v42 }
 0x49d   :  { %v1341_v56 = vpop.f32.mrf.mxu1 }
 0x49e   :  { %v1342_v57 = vadd.f32 %v1341_v56, %v1340_v43 }
 0x49f   :  { %v1343_v60 = vpop.f32.mrf.mxu1 }
 0x4a0   :  { %1727 = vtanh.f32 %v1342_v57 }
 0x4a1   :  { %v1344_v62 = vpop.f32.mrf.mxu1 }
 0x4a2   :  { %v1345_v61 = vadd.f32 %v1344_v62, %v1343_v60 }
 0x4a3   :  { %v1346_v63 = vpop.f32.mrf.mxu1 }
 0x4a4   :  { %1729 = vtanh.f32 %v1345_v61 }
 0x4a5   :  { %v1347_v0 = vpop.f32.mrf.mxu1 }
 0x4a6   :  { %v1348_v59 = vadd.f32 %v1347_v0, %v1346_v63 }
 0x4a8   :  { %1731 = vtanh.f32 %v1348_v59 }
 0x4a9   :  { %v1726_v58 = vpop.eup %1725 }
 0x4aa   :  { %1086 = vst [vmem:[#allocation10] sm:$0xff] %v1726_v58 }
 0x4ad   :  { %v1728_v2 = vpop.eup %1727 }
 0x4ae   :  { %1087 = vst [vmem:[#allocation10 + $0x8] sm:$0xff] %v1728_v2 }
 0x4b1   :  { %v1730_v3 = vpop.eup %1729 }
 0x4b2   :  { %1088 = vst [vmem:[#allocation10 + $0x10] sm:$0xff] %v1730_v3 }
 0x4b5   :  { %v1732_v4 = vpop.eup %1731 }
 0x4b6   :  { %1089 = vst [vmem:[#allocation10 + $0x18] sm:$0xff] %v1732_v4 }
 0x4d4   :  { %v1349_v9 = vpop.f32.mrf.mxu1 }
 0x4d6   :  { %v1350_v6 = vpop.f32.mrf.mxu1 }
 0x4d7   :  { %v1351_v10 = vadd.f32 %v1350_v6, %v1349_v9 }
 0x4d8   :  { %v1352_v12 = vpop.f32.mrf.mxu1 }
 0x4d9   :  { %1733 = vtanh.f32 %v1351_v10 }
 0x4da   :  { %v1353_v13 = vpop.f32.mrf.mxu1 }
 0x4db   :  { %v1354_v15 = vadd.f32 %v1353_v13, %v1352_v12 }
 0x4dc   :  { %v1355_v16 = vpop.f32.mrf.mxu1 }
 0x4dd   :  { %1735 = vtanh.f32 %v1354_v15 }
 0x4de   :  { %v1356_v18 = vpop.f32.mrf.mxu1 }
 0x4df   :  { %v1357_v19 = vadd.f32 %v1356_v18, %v1355_v16 }
 0x4e0   :  { %v1358_v21 = vpop.f32.mrf.mxu1 }
 0x4e1   :  { %1737 = vtanh.f32 %v1357_v19 }
 0x4e2   :  { %v1359_v22 = vpop.f32.mrf.mxu1 }
 0x4e3   :  { %v1360_v24 = vadd.f32 %v1359_v22, %v1358_v21 }
 0x4e5   :  { %1739 = vtanh.f32 %v1360_v24 }
 0x4e6   :  { %v1734_v26 = vpop.eup %1733 }
 0x4e7   :  { %1090 = vst [vmem:[#allocation10 + $0x20] sm:$0xff] %v1734_v26 }
 0x4ea   :  { %v1736_v29 = vpop.eup %1735 }
 0x4eb   :  { %1091 = vst [vmem:[#allocation10 + $0x28] sm:$0xff] %v1736_v29 }
 0x4ee   :  { %v1738_v30 = vpop.eup %1737 }
 0x4ef   :  { %1092 = vst [vmem:[#allocation10 + $0x30] sm:$0xff] %v1738_v30 }
 0x4f2   :  { %v1740_v33 = vpop.eup %1739 }
 0x4f3   :  { %1093 = vst [vmem:[#allocation10 + $0x38] sm:$0xff] %v1740_v33 }
 0x4f4   :  { %1852 = shalt.err (!%p1849_p1)
}
 0x4f5   :  { %1113 = dma.vmem_to_hbm [thread:$0]  %s1108_s16, 1024, %s2381_s4, [#allocation4], %s1873_s23, %s1873_s23, %s1874_s24  }
 0x4f6   :  { %1867 = dma.done.wait [#allocation4], 1024  }
 0x4f7   :  { %1868 = vsyncadd [#allocation4], 4294966272 }
 0x4f8   :  { %1869 = dma.done.wait [#allocation12], 1024  }
 0x4f9   :  { %1870 = vsyncadd [#allocation12], 4294966272 }
 0x4fa   :  { %1132 = vsyncpa [#allocation3], 1 }
 0x4fb   :  { %1133 = vsyncpa [#allocation6], 1 }
 0x4fc   :  { %1134 = vsyncpa [#allocation9], 1 }
 0x4fd   :  { %1135 = vsyncpa [#allocation4], 1 }
 0x4fe   :  { %1136 = vsyncpa [#allocation12], 1 }

</bundles_post_ra>
